<compile_context>
chip_gen: v5e
topology: v5e:2x2
jax: 0.10.0
libtpu: 0.0.40
codegen_flags: <defaults>
</compile_context>

<pallas_src>
import jax
import jax.numpy as jnp
from jax.experimental import pallas as pl
from jax.experimental.pallas import tpu as pltpu

_LANE = 128
_MIB = 1024 * 1024


def _base_head_kernel(x_ref, o_ref):
    # TODO(synk): BaseHead.forward is @abstractmethod in PyTorch (raises
    # NotImplementedError), so there is no concrete head compute to reproduce.
    # Subclasses replace this tile body with their projection / classifier
    # math; the base class behaves as an identity pass-through of the tile.
    o_ref[...] = x_ref[...]


def _sublane_multiple(dtype) -> int:
    # Sub-32-bit dtypes pack along sublanes: bf16 wants x16, int8/fp8 want x32.
    return {4: 8, 2: 16, 1: 32}.get(jnp.dtype(dtype).itemsize, 8)


def _vmem_tile_budget_bytes() -> int:
    """Generation-aware budget for the 4 double-buffered tiles (2 in + 2 out).

    Scoped-VMEM defaults: v5e 16 MiB (of 128 physical), v6e 32 MiB (of 128),
    v7x 32 MiB (of 64).  Stay comfortably under each without flags.
    """
    safe = 12 * _MIB  # fits v5e's 16 MiB scoped default
    try:
        kind = jax.devices()[0].device_kind.lower()
    except Exception:
        return safe
    if "v5" in kind:
        return safe
    # v6e / v7x (and newer): 32 MiB scoped default -> ~24 MiB with headroom.
    return 24 * _MIB


def _largest_aligned_divisor(n: int, cap: int, mult: int) -> int:
    """Largest d <= cap with n % d == 0 and d % mult == 0 (assumes n % mult == 0)."""
    cap = min(cap, n)
    d = max((cap // mult) * mult, mult)
    while d > mult and n % d != 0:
        d -= mult
    return d


def base_head_forward(base_model_output_feature: jnp.ndarray) -> jnp.ndarray:
    """BaseHead.forward for the abstract base class: zero-cost identity.

    The base class has no compute, so no kernel is launched and no HBM traffic
    is generated.  Concrete subclasses use `base_head_forward_pallas` as their
    tiled Pallas scaffold.
    """
    return base_model_output_feature


def base_head_forward_pallas(base_model_output_feature: jnp.ndarray) -> jnp.ndarray:
    """Tiled Pallas scaffold for BaseHead subclasses (identity tile body).

    Tiles the natural (batch, input_dim) layout directly -- no lane-dense
    reshape, so no extra HBM relayout copies around the custom-call boundary.
    """
    x = base_model_output_feature
    batch, input_dim = x.shape
    itemsize = jnp.dtype(x.dtype).itemsize
    sub = _sublane_multiple(x.dtype)

    if input_dim % _LANE != 0 or batch % sub != 0:
        # Ragged shapes: one full-array block (allowed by the (8,128) rule when
        # block dims equal the array dims).  Keeps row semantics intact for any
        # subclass that does per-row math.
        tb = batch
    else:
        budget = _vmem_tile_budget_bytes()
        # 2 double-buffered input tiles + 2 double-buffered output tiles.
        tb_budget = max(sub, (budget // (4 * input_dim * itemsize) // sub) * sub)
        # Keep >= 4 grid steps when batch allows it: prefetch/writeback overlap
        # stays active and v7x's two TensorCores both get work.
        tb_cap = max(sub, ((batch // 4) // sub) * sub) if batch >= 4 * sub else batch
        # Sublane-aligned divisor of batch -> never a ragged last tile.
        tb = _largest_aligned_divisor(batch, min(tb_budget, tb_cap), sub)

    grid = (batch // tb,)

    return pl.pallas_call(
        _base_head_kernel,
        out_shape=jax.ShapeDtypeStruct((batch, input_dim), x.dtype),
        grid=grid,
        in_specs=[pl.BlockSpec((tb, input_dim), lambda i: (i, 0))],
        out_specs=pl.BlockSpec((tb, input_dim), lambda i: (i, 0)),
        # NOTE: no input_output_aliases -- the caller's buffer is not donated,
        # so aliasing would just force XLA to insert a defensive copy.
        compiler_params=pltpu.CompilerParams(
            # Row tiles are independent -> shard across v7x's two TensorCores;
            # neutral on single-TC v5e/v6e.  Default Buffered(2) pipelining.
            dimension_semantics=("parallel",)),
    )(x)


if __name__ == "__main__":
    key = jax.random.PRNGKey(0)
    k_small, k_big = jax.random.split(key)

    # 1) Shape implied by the module: BaseHead(input_dim=32), batch=2.
    x_small = jax.random.normal(k_small, (2, 32), dtype=jnp.float32)

    # Abstract base-class path: zero-cost identity (no kernel, 0 bytes moved).
    out_id = jax.block_until_ready(base_head_forward(x_small))
    assert out_id.shape == x_small.shape and out_id.dtype == x_small.dtype
    assert bool(jnp.allclose(out_id, x_small)), "identity fast-path mismatch"

    # Scaffold kernel on the same small shape: single full-array block.
    out_small = jax.block_until_ready(base_head_forward_pallas(x_small))
    assert out_small.shape == x_small.shape and out_small.dtype == x_small.dtype
    assert bool(jnp.allclose(out_small, x_small)), "small kernel identity mismatch"

    # 2) Lane/sublane-aligned feature slab exercising the tiled, pipelined path
    #    (256 x 256 f32 -> tb=64, grid=(4,), natural layout, no reshape).
    x_big = jax.random.normal(k_big, (256, 256), dtype=jnp.float32)
    out_big = jax.block_until_ready(base_head_forward_pallas(x_big))
    assert out_big.shape == x_big.shape and out_big.dtype == x_big.dtype
    assert bool(jnp.allclose(out_big, x_big)), "tiled kernel identity mismatch"

    print("KERNEL_OK")
</pallas_src>

<mosaic_0001>
module attributes {stable_mosaic.version = 11 : i64} {
  func.func @_base_head_kernel(%arg0: i32, %arg1: memref<2x32xf32, #tpu.memory_space<vmem>>, %arg2: memref<2x32xf32, #tpu.memory_space<vmem>>) attributes {dimension_semantics = [#tpu.dimension_semantics<parallel>], iteration_bounds = array<i64: 1>, scalar_prefetch = 0 : i64, scratch_operands = 0 : i64, tpu.core_type = #tpu.core_type<tc>, window_params = [{transform_indices = @transform_0, window_bounds = array<i64: 2, 32>}, {transform_indices = @transform_1, window_bounds = array<i64: 2, 32>}]} {
    %c0 = arith.constant 0 : index
    %c0_0 = arith.constant 0 : index
    %0 = vector.load %arg1[%c0, %c0_0] : memref<2x32xf32, #tpu.memory_space<vmem>>, vector<2x32xf32>
    %c0_1 = arith.constant 0 : index
    %c0_2 = arith.constant 0 : index
    %1 = vector.load %arg2[%c0_1, %c0_2] : memref<2x32xf32, #tpu.memory_space<vmem>>, vector<2x32xf32>
    tpu.vector_store %arg2[%c0_1, %c0_2], %0 {strides = array<i32>} : memref<2x32xf32, #tpu.memory_space<vmem>>, vector<2x32xf32>,
    return
  }
  func.func @transform_0(%arg0: i32) -> (i32, i32) {
    %c0_i32 = arith.constant 0 : i32
    %c0_i32_0 = arith.constant 0 : i32
    return %arg0, %c0_i32 : i32, i32
  }
  func.func @transform_1(%arg0: i32) -> (i32, i32) {
    %c0_i32 = arith.constant 0 : i32
    %c0_i32_0 = arith.constant 0 : i32
    return %arg0, %c0_i32 : i32, i32
  }
}

</mosaic_0001>

<bundles_post_ra>
// kernel: tpu_custom_call.1
= control target key start
LH: loop header
LB: loop body
LE: loop exit
PB: predicated region body
PF: predicated region fallthrough
CT: control target
= control target key end

     0   :  { %6 = vsyncpa [#allocation3], 0  ;;  %s115_s0 = inlined_call_operand.hbm [shape: f32[2,32], index: 0, kind: input, shape index: {}]   ;;  %s116_s1 = inlined_call_operand.hbm [shape: f32[2,32], index: 1, kind: output, shape index: {}]  }
   0x1   :  { %7 = vsyncpa [#allocation4], 0  ;;  %s13_s8 = sshll.u32 %s115_s0, 4  ;;  %s97_s9 = smov [#allocation2]   ;;  %s14_s8 = int_to_ptr.hbm [resolvable:$true] %s13_s8 }
   0x2   :  { %s15_s10 = sshll.u32 %s97_s9, 4  ;;  %s16_s10 = int_to_ptr.vmem [resolvable:$true] %s15_s10 }
   0x3   :  { %18 = dma.hbm_to_vmem [thread:$0]  %s14_s8, 32, %s16_s10, [#allocation3]  }
   0x4   :  { %93 = dma.done.wait [#allocation3], 32  }
   0x5   :  { %94 = vsyncadd [#allocation3], 4294967264  ;;  %s98_s11 = smov [#allocation5]   ;;  %s33_s15 = sshll.u32 %s116_s1, 4  ;;  %vm24_vm0 = vcmask 254976   ;;  %s34_s15 = int_to_ptr.hbm [resolvable:$true] %s33_s15 }
   0x6   :  { %s31_s12 = sshll.u32 %s98_s11, 4  ;;  %v23_v0 = vld [vmem:[#allocation2] sm:$0x3]  ;;  %s32_s12 = int_to_ptr.vmem [resolvable:$true] %s31_s12 }
   0x7   :  { %25 = vst.msk [vmem:[#allocation5] sm:$0x3] %vm24_vm0, %v23_v0 }
   0x8   :  { %36 = dma.vmem_to_hbm [thread:$0]  %s32_s12, 32, %s34_s15, [#allocation4]  }
   0x9   :  { %95 = dma.done.wait [#allocation4], 32  }
   0xa   :  { %96 = vsyncadd [#allocation4], 4294967264 }
   0xb   :  { %41 = vsyncpa [#allocation3], 1 }
   0xc   :  { %42 = vsyncpa [#allocation4], 1 }

</bundles_post_ra>
